<compile_context>
chip_gen: v7x
topology: tpu7x:2x2x1
jax: 0.10.0
libtpu: 0.0.40
codegen_flags: <defaults>
</compile_context>

<pallas_src>
import jax
import jax.numpy as jnp
from jax.experimental import pallas as pl
from jax.experimental.pallas import tpu as pltpu


def _round_up(v, m):
    return ((v + m - 1) // m) * m


def _round_down(v, m):
    return (v // m) * m


def _pad2d(a, rows, cols, dtype):
    a = a.astype(dtype)
    pr, pc = rows - a.shape[0], cols - a.shape[1]
    if pr or pc:
        a = jnp.pad(a, ((0, pr), (0, pc)))
    return a


def _vmem_capacity_bytes():
    """Physical per-TensorCore VMEM (128 MiB v5e/v6e, 64 MiB v7x); safe fallback."""
    try:
        cap = getattr(pltpu.get_tpu_info(), "vmem_capacity_bytes", None)
        if cap:
            return int(cap)
    except Exception:
        pass
    return 64 << 20  # conservative default (v7x per-TC VMEM)


# ----------------------------- kernels --------------------------------------


def _make_direct_kernel(compute_dtype, has_bias):
    """Single-pass kernel: full-K weight tile resident, no accumulator scratch."""
    if has_bias:
        def kernel(x_ref, w_ref, b_ref, o_ref):
            # In-kernel cast of the x tile (VPU, hidden under MXU/DMA) avoids a
            # wrapper-side HBM pass that materializes a converted copy of x.
            acc = jnp.dot(x_ref[...].astype(compute_dtype), w_ref[...],
                          preferred_element_type=jnp.float32)
            o_ref[...] = (acc + b_ref[...].astype(jnp.float32)).astype(o_ref.dtype)
    else:
        def kernel(x_ref, w_ref, o_ref):
            acc = jnp.dot(x_ref[...].astype(compute_dtype), w_ref[...],
                          preferred_element_type=jnp.float32)
            o_ref[...] = acc.astype(o_ref.dtype)
    return kernel


def _make_ktiled_kernel(compute_dtype, has_bias, c_in, bk):
    """K-tiled kernel with f32 accumulator (fallback for very large C_in)."""
    ragged_k = (c_in % bk) != 0

    def compute(x_ref, w_ref, o_ref, acc_ref, b_ref):
        k = pl.program_id(2)

        @pl.when(k == 0)
        def _():
            if has_bias:
                # Fold bias into the accumulator init: removes one full VPU add
                # + acc re-read pass from the epilogue.
                acc_ref[...] = jnp.broadcast_to(
                    b_ref[...].astype(jnp.float32), acc_ref.shape)
            else:
                acc_ref[...] = jnp.zeros_like(acc_ref)

        x = x_ref[...]
        if ragged_k:
            # Final K block reads past c_in; zero it explicitly.  Do NOT rely on
            # zero weight rows cancelling OOB garbage (0 * NaN = NaN).
            col = jax.lax.broadcasted_iota(jnp.int32, x.shape, 1) + k * bk
            x = jnp.where(col < c_in, x, jnp.zeros_like(x))

        acc_ref[...] += jnp.dot(x.astype(compute_dtype), w_ref[...],
                                preferred_element_type=jnp.float32)

        @pl.when(k == pl.num_programs(2) - 1)
        def _():
            o_ref[...] = acc_ref[...].astype(o_ref.dtype)

    if has_bias:
        def kernel(x_ref, w_ref, b_ref, o_ref, acc_ref):
            compute(x_ref, w_ref, o_ref, acc_ref, b_ref)
    else:
        def kernel(x_ref, w_ref, o_ref, acc_ref):
            compute(x_ref, w_ref, o_ref, acc_ref, None)
    return kernel


# ----------------------------- wrapper ---------------------------------------


def linear_conv(x, weight_t, bias=None, *, compute_dtype=None, block_n=None,
                block_k=512, min_pallas_elems=1 << 14, _force_k_tiled=False):
    """y = x @ weight_t + bias via a Pallas TPU kernel.

    x:        [N, C_in]     (streamed unpadded / uncast straight from HBM)
    weight_t: [C_in, C_out] (transpose of PyTorch's [out, in]; zero-padded to lane-dense)
    bias:     [C_out] / [1, C_out] or None
    returns:  [N, C_out] in x.dtype
    """
    n, c_in = x.shape
    c_out = weight_t.shape[1]
    out_dtype = x.dtype
    if compute_dtype is None:
        compute_dtype = x.dtype
    compute_dtype = jnp.dtype(compute_dtype)
    has_bias = bias is not None

    # Toy problems: fixed per-step pallas_call overhead dominates; let XLA fuse it.
    if (n * c_in < min_pallas_elems and c_in * c_out < min_pallas_elems
            and not _force_k_tiled):
        y = jnp.dot(x.astype(compute_dtype), weight_t.astype(compute_dtype),
                    preferred_element_type=jnp.float32)
        if has_bias:
            y = y + bias.reshape(1, -1).astype(jnp.float32)
        return y.astype(out_dtype)

    x_item = jnp.dtype(x.dtype).itemsize      # x is streamed unconverted from HBM
    w_item = compute_dtype.itemsize
    out_item = jnp.dtype(out_dtype).itemsize

    # Lane-dense output: pad C_out to a multiple of 128 -> unmasked vst.
    # (128, not 256, even on v6e/v7x: MXU pass count is the same either way while
    #  the extra lanes would cost real HBM bytes in this memory-bound regime.)
    c_out_pad = _round_up(c_out, 128)

    # ----- generation-aware VMEM budget and preferred row tile -------------------
    cap = _vmem_capacity_bytes()
    budget = cap * 3 // 4             # ~48 MiB on v7x, ~96 MiB on v5e/v6e
    if block_n is not None:
        bn_pref = max(8, _round_up(block_n, 8))
    elif budget >= (80 << 20):        # v5e / v6e: 128 MiB physical VMEM
        bn_pref = 2048 if c_out_pad <= 512 else 1024
    else:                             # v7x: 64 MiB per-TC VMEM
        bn_pref = 512

    bias2d = _pad2d(bias.reshape(1, -1), 1, c_out_pad, jnp.float32) if has_bias else None

    # ----- path selection ---------------------------------------------------------
    # Path A (common GNN case): a full-K weight tile (c_in, tn) fits VMEM, so it stays
    # resident (one DMA when nj == 1) and there is NO reduction axis / accumulator.
    tn = c_out_pad
    while tn > 128 and 2 * c_in * tn * w_item > budget // 2:
        tn = max(128, _round_down(tn // 2, 128))
    use_direct = (not _force_k_tiled) and (2 * c_in * tn * w_item <= budget // 2)

    if use_direct:
        nj = pl.cdiv(c_out_pad, tn)
        fixed = 2 * c_in * tn * w_item + (2 * tn * 4 if has_bias else 0)
        per_row = 2 * (c_in * x_item + tn * out_item)       # double-buffered x / out
        bn_cap = max(8, _round_down(max(budget - fixed, 0) // per_row, 8))
        bn = max(8, min(bn_pref, bn_cap, _round_up(n, 8)))
        ni = pl.cdiv(n, bn)

        wp = _pad2d(weight_t, c_in, c_out_pad, compute_dtype)

        in_specs = [
            pl.BlockSpec((bn, c_in), lambda i, j: (i, 0)),   # x row tile, full K
            pl.BlockSpec((c_in, tn), lambda i, j: (0, j)),   # resident weight tile
        ]
        operands = [x, wp]
        if has_bias:
            in_specs.append(pl.BlockSpec((1, tn), lambda i, j: (0, j)))
            operands.append(bias2d)

        kernel = _make_direct_kernel(compute_dtype, has_bias)
        grid = (ni, nj)
        out_specs = pl.BlockSpec((bn, tn), lambda i, j: (i, j))
        scratch_shapes = []
        semantics = ("parallel", "parallel")

        vmem_est = (2 * bn * c_in * x_item + 2 * c_in * tn * w_item
                    + 2 * bn * tn * out_item + (2 * tn * 4 if has_bias else 0))
        w_streams = ni if nj > 1 else 1                      # weight DMA'd once when nj == 1
        bytes_accessed = (n * c_in * x_item
                          + w_streams * c_in * c_out_pad * w_item
                          + n * c_out_pad * out_item)
    else:
        # Path B: C_in too large for a resident full-K weight tile -> K-tiled accumulate.
        bk = max(128, _round_up(min(block_k, _round_up(c_in, 128)), 128))
        nk = pl.cdiv(c_in, bk)
        k_pad = nk * bk
        tn = c_out_pad
        while tn > 128 and 2 * bk * tn * w_item > budget // 3:
            tn = max(128, _round_down(tn // 2, 128))
        nj = pl.cdiv(c_out_pad, tn)

        fixed = 2 * bk * tn * w_item + (2 * tn * 4 if has_bias else 0)
        per_row = 2 * bk * x_item + 2 * tn * out_item + tn * 4   # x, out, f32 acc
        bn_cap = max(8, _round_down(max(budget - fixed, 0) // per_row, 8))
        bn = max(8, min(bn_pref, bn_cap, _round_up(n, 8)))
        ni = pl.cdiv(n, bn)

        # Only the (small) weight is zero-padded in K; x is streamed as-is and the
        # ragged final K block is masked in-kernel.
        wp = _pad2d(weight_t, k_pad, c_out_pad, compute_dtype)

        in_specs = [
            pl.BlockSpec((bn, bk), lambda i, j, k: (i, k)),
            pl.BlockSpec((bk, tn), lambda i, j, k: (k, j)),
        ]
        operands = [x, wp]
        if has_bias:
            in_specs.append(pl.BlockSpec((1, tn), lambda i, j, k: (0, j)))
            operands.append(bias2d)

        kernel = _make_ktiled_kernel(compute_dtype, has_bias, c_in, bk)
        grid = (ni, nj, nk)
        out_specs = pl.BlockSpec((bn, tn), lambda i, j, k: (i, j))
        scratch_shapes = [pltpu.VMEM((bn, tn), jnp.float32)]
        semantics = ("parallel", "parallel", "arbitrary")

        vmem_est = (2 * bn * bk * x_item + 2 * bk * tn * w_item
                    + 2 * bn * tn * out_item + bn * tn * 4
                    + (2 * tn * 4 if has_bias else 0))
        bytes_accessed = (nj * n * c_in * x_item
                          + ni * k_pad * c_out_pad * w_item
                          + n * c_out_pad * out_item)

    vmem_limit = max(int(vmem_est) + (8 << 20), 32 << 20)
    vmem_limit = int(min(vmem_limit, cap - (4 << 20)))

    cost = pl.CostEstimate(flops=2 * n * c_in * c_out_pad,
                           transcendentals=0,
                           bytes_accessed=int(bytes_accessed))

    out = pl.pallas_call(
        kernel,
        out_shape=jax.ShapeDtypeStruct((n, c_out_pad), out_dtype),
        grid_spec=pltpu.PrefetchScalarGridSpec(
            num_scalar_prefetch=0,
            grid=grid,
            in_specs=in_specs,
            out_specs=out_specs,
            scratch_shapes=scratch_shapes,
        ),
        compiler_params=pltpu.CompilerParams(
            dimension_semantics=semantics,
            vmem_limit_bytes=vmem_limit,
        ),
        cost_estimate=cost,
    )(*operands)

    # Rows are exact (cdiv grid + masked boundary blocks); only the lane padding of
    # C_out may need stripping.
    return out if c_out_pad == c_out else out[:, :c_out]


# ----------------------------- module mirror ---------------------------------


class LinearConvPallas:
    """Mirrors LinearConv(in_channels, out_channels, bias=True)."""

    def __init__(self, in_channels, out_channels, bias=True, key=None):
        self.in_channels = in_channels
        self.out_channels = out_channels
        if key is None:
            key = jax.random.PRNGKey(0)
        k_w, k_b = jax.random.split(key)
        # Deterministic init mimicking torch.nn.Linear's kaiming-uniform bound.
        bound = 1.0 / jnp.sqrt(jnp.array(in_channels, jnp.float32))
        w = jax.random.uniform(
            k_w, (out_channels, in_channels), jnp.float32, -bound, bound)
        self.weight_t = jnp.asarray(w.T)                     # [C_in, C_out]
        if bias:
            self.bias = jax.random.uniform(
                k_b, (1, out_channels), jnp.float32, -bound, bound)
        else:
            self.bias = None

    def __call__(self, x, edge_index=None, edge_weight=None, *, compute_dtype=None):
        # edge_index / edge_weight are unused by the reference forward.
        return linear_conv(x, self.weight_t, self.bias, compute_dtype=compute_dtype)


# ----------------------------- demo / check -----------------------------------


if __name__ == "__main__":
    key = jax.random.PRNGKey(0)
    k_x, k_params, k_ei = jax.random.split(key, 3)

    # Shapes chosen to exercise the real kernel paths:
    #   N = 1000 (not a row-tile multiple -> masked boundary block, no wrapper pad)
    #   C_in = 192 (not a 128 multiple -> full-dim K block in Path A, ragged K mask in Path B)
    #   C_out = 96 (lane-padded 96 -> 128)
    num_nodes = 1000
    in_channels = 192
    out_channels = 96

    x = jax.random.normal(k_x, (num_nodes, in_channels), jnp.float32)
    edge_index = jax.random.randint(k_ei, (2, 16), 0, num_nodes)   # ignored by LinearConv

    model = LinearConvPallas(in_channels, out_channels, bias=True, key=k_params)
    y_ref = x @ model.weight_t + model.bias            # plain JAX reference

    # Path A: single-pass resident-weight kernel, f32 compute.
    y = jax.block_until_ready(model(x, edge_index))
    assert y.shape == (num_nodes, out_channels)
    assert jnp.allclose(y, y_ref, atol=2e-4, rtol=2e-4)

    # Path A with bf16 MXU inputs: in-kernel cast of x, f32 accumulate + f32 bias.
    y_bf16 = jax.block_until_ready(model(x, edge_index, compute_dtype=jnp.bfloat16))
    assert y_bf16.shape == (num_nodes, out_channels)
    assert jnp.allclose(y_bf16, y_ref, atol=1e-1, rtol=1e-1)

    # Path B (forced): K-tiled accumulator kernel; 192 % 128 != 0 exercises the
    # in-kernel ragged-K mask and the bias-folded accumulator init.
    y_kt = jax.block_until_ready(
        linear_conv(x, model.weight_t, model.bias, block_k=128, _force_k_tiled=True))
    assert jnp.allclose(y_kt, y_ref, atol=2e-4, rtol=2e-4)

    # Path B without bias.
    y_nb = jax.block_until_ready(
        linear_conv(x, model.weight_t, None, block_k=128, _force_k_tiled=True))
    assert jnp.allclose(y_nb, x @ model.weight_t, atol=2e-4, rtol=2e-4)

    # Tiny-shape dispatch (bypasses Pallas: fixed per-call overhead would dominate).
    x_tiny = jax.random.normal(k_x, (8, 32), jnp.float32)
    m_tiny = LinearConvPallas(32, 16, bias=True, key=k_params)
    y_tiny = jax.block_until_ready(m_tiny(x_tiny, edge_index))
    assert jnp.allclose(y_tiny, x_tiny @ m_tiny.weight_t + m_tiny.bias,
                        atol=1e-5, rtol=1e-5)

    print("KERNEL_OK")
</pallas_src>

<mosaic_0001>
module attributes {stable_mosaic.version = 11 : i64} {
  func.func @kernel(%arg0: i32, %arg1: i32, %arg2: memref<512x192xf32, #tpu.memory_space<vmem>>, %arg3: memref<192x128xf32, #tpu.memory_space<vmem>>, %arg4: memref<1x128xf32, #tpu.memory_space<vmem>>, %arg5: memref<512x128xf32, #tpu.memory_space<vmem>>) attributes {dimension_semantics = [#tpu.dimension_semantics<parallel>, #tpu.dimension_semantics<parallel>], iteration_bounds = array<i64: 2, 1>, scalar_prefetch = 0 : i64, scratch_operands = 0 : i64, tpu.core_type = #tpu.core_type<tc>, window_params = [{transform_indices = @transform_0, window_bounds = array<i64: 512, 192>}, {transform_indices = @transform_1, window_bounds = array<i64: 192, 128>}, {transform_indices = @transform_2, window_bounds = array<i64: 1, 128>}, {transform_indices = @transform_3, window_bounds = array<i64: 512, 128>}]} {
    %c0 = arith.constant 0 : index
    %c0_0 = arith.constant 0 : index
    %0 = vector.load %arg2[%c0, %c0_0] : memref<512x192xf32, #tpu.memory_space<vmem>>, vector<512x192xf32>
    %c0_1 = arith.constant 0 : index
    %c0_2 = arith.constant 0 : index
    %1 = vector.load %arg3[%c0_1, %c0_2] : memref<192x128xf32, #tpu.memory_space<vmem>>, vector<192x128xf32>
    %cst = arith.constant dense<0.000000e+00> : vector<512x128xf32>
    %2 = tpu.matmul %0, %1, %cst {dimension_numbers = #tpu.dot_dimension_numbers<[1], [0], [0], [1], [0, 0, 1, 1], [], []>} : vector<512x192xf32>, vector<192x128xf32>, vector<512x128xf32> -> vector<512x128xf32>
    %c0_3 = arith.constant 0 : index
    %c0_4 = arith.constant 0 : index
    %3 = vector.load %arg4[%c0_3, %c0_4] : memref<1x128xf32, #tpu.memory_space<vmem>>, vector<1x128xf32>
    %4 = vector.broadcast %3 : vector<1x128xf32> to vector<512x128xf32>
    %5 = arith.addf %2, %4 : vector<512x128xf32>
    %c0_5 = arith.constant 0 : index
    %c0_6 = arith.constant 0 : index
    %6 = vector.load %arg5[%c0_5, %c0_6] : memref<512x128xf32, #tpu.memory_space<vmem>>, vector<512x128xf32>
    tpu.vector_store %arg5[%c0_5, %c0_6], %5 {strides = array<i32>} : memref<512x128xf32, #tpu.memory_space<vmem>>, vector<512x128xf32>,
    return
  }
  func.func @transform_0(%arg0: i32, %arg1: i32) -> (i32, i32) {
    %c0_i32 = arith.constant 0 : i32
    %c0_i32_0 = arith.constant 0 : i32
    return %arg0, %c0_i32 : i32, i32
  }
  func.func @transform_1(%arg0: i32, %arg1: i32) -> (i32, i32) {
    %c0_i32 = arith.constant 0 : i32
    %c0_i32_0 = arith.constant 0 : i32
    return %c0_i32, %arg1 : i32, i32
  }
  func.func @transform_2(%arg0: i32, %arg1: i32) -> (i32, i32) {
    %c0_i32 = arith.constant 0 : i32
    %c0_i32_0 = arith.constant 0 : i32
    return %c0_i32, %arg1 : i32, i32
  }
  func.func @transform_3(%arg0: i32, %arg1: i32) -> (i32, i32) {
    %c0_i32 = arith.constant 0 : i32
    return %arg0, %arg1 : i32, i32
  }
}

</mosaic_0001>

<bundles_post_ra>
// kernel: tpu_custom_call.1
= control target key start
LH: loop header
LB: loop body
LE: loop exit
PB: predicated region body
PF: predicated region fallthrough
CT: control target
= control target key end

     0   :  { %8 = vsyncpa [#allocation3], 0  ;;  %s2037_s0 = inlined_call_operand.vmem [shape: f32[1000,192], index: 0, kind: input, shape index: {}]   ;;  %s2038_s1 = inlined_call_operand.vmem [shape: f32[192,128], index: 1, kind: input, shape index: {}]   ;;  %s2039_s2 = inlined_call_operand.vmem [shape: f32[1,128], index: 2, kind: input, shape index: {}]   ;;  %s2040_s3 = inlined_call_operand.hbm [shape: f32[1000,128], index: 3, kind: output, shape index: {}]  }
   0x1   :  { %10 = vsyncpa [#allocation3 + $0x1], 0  ;;  %s1478_s12 = smov 0   ;;  %s1480_s13 = smov 0  }
   0x2   :  { %s1482_s14 = smov 0   ;;  %s1484_s15 = smov 0  }
   0x3   :  { %s1486_s16 = smov 0   ;;  %s1488_s17 = smov 0  }
   0x4 LB: > { %s1170_s18 = sadd.s32 4294967295, %s1452_s17   ;;  %s1171_s19 = sadd.s32 4294967294, %s1452_s17   ;;  %s1452_s17 = sphi %s1488_s17, %s16_s17   ;;  %s1448_s16 = sphi %s1486_s16, %s2047_s16   ;;  %s1444_s15 = sphi %s1484_s15, %s2046_s15   ;;  %s1440_s14 = sphi %s1482_s14, %s2045_s14   ;;  %s1436_s13 = sphi %s1480_s13, %s2044_s13   ;;  %s1432_s12 = sphi %s1478_s12, %s2043_s12  }
   0x5   : > { %s28_s20 = sadd.s32 1, %s1448_s16  ;;  %s115_s21 = sadd.s32 1, %s1440_s14 }
   0x6   : > { %p30_p0 = scmp.ge.s32.totalorder %s28_s20, 2  ;;  %p125_p1 = scmp.ne.s32.totalorder %s1440_s14, %s1436_s13 }
   0x7   : > { %p126_p2 = scmp.eq.s32.totalorder %s1170_s18, 1  ;;  %p131_p3 = scmp.ne.s32.totalorder %s1436_s13, %s1432_s12 }
   0x8   : > { %s2049_s20 = smov (%p30_p0, %s28_s20), 0  ;;  %p132_p5 = scmp.eq.s32.totalorder %s1171_s19, 1 }
   0x9   : > { %p1518_p4 = por %p126_p2, %p125_p1  ;;  %s110_s23 = ssub.s32 %s1448_s16, %s2049_s20 }
   0xa   : > { %p1176_p6 = scmp.ge.s32.totalorder %s1452_s17, 1  ;;  %p113_p7 = scmp.eq.s32.totalorder %s110_s23, 0 }
   0xb   : > { %p1525_p8 = por %p132_p5, %p131_p3  ;;  %p183_p9 = scmp.lt.s32.totalorder %s1452_s17, 3 }
   0xc   : > { %s1531_s25 = scalar_select %p113_p7, %s1440_s14, %s115_s21  }
   0xd   : > { %p184_p10 = pnand %p1176_p6, %p183_p9 }
   0xe   : > { %v377_v0 = vld [vmem:[%s2038_s1] sm:$0xff] (!%p184_p10)  ;;  %v378_v1 = vld [vmem:[%s2038_s1 + $0x8] sm:$0xff] (!%p184_p10)  ;;  %v379_v2 = vld [vmem:[%s2038_s1 + $0x10] sm:$0xff] (!%p184_p10)  ;;  %s1543_s5 = sshll.u32 (!%p184_p10), %s1444_s15, 6  ;;  %v1454_v3 = vmov (!%p184_p10), 0.0|0.0   ;;  %vm408_vm0 = vcmask (!%p184_p10), 523264  }
   0xf   : > { %187 = sbr.rel (%p184_p10) target bundleno = 431 (0x1af), region = 32  ;;  %1257 = vmatprep.subr.bf16.mxu0 (!%p184_p10), %v1454_v3  ;;  %1293 = vmatprep.subr.bf16.mxu1 (!%p184_p10), %v1454_v3  ;;  %v1258_v4 = vpack.c.bf16 (!%p184_p10), %v378_v1, %v377_v0  ;;  %v380_v5 = vld [vmem:[%s2038_s1 + $0x18] sm:$0xff] (!%p184_p10)  ;;  %p226_p11 = scmp.lt.s32.totalorder (!%p184_p10), %s1543_s5, 124  ;;  %v381_v7 = vld [vmem:[%s2038_s1 + $0x20] sm:$0xff] (!%p184_p10)  ;;  %v382_v8 = vld [vmem:[%s2038_s1 + $0x28] sm:$0xff] (!%p184_p10) }
  0x10   : > { %v1261_v6 = vpack.c.bf16 (!%p184_p10), %v380_v5, %v379_v2  ;;  %v1264_v9 = vpack.c.bf16 (!%p184_p10), %v382_v8, %v381_v7  ;;  %v383_v10 = vld [vmem:[%s2038_s1 + $0x30] sm:$0xff] (!%p184_p10)  ;;  %v384_v11 = vld [vmem:[%s2038_s1 + $0x38] sm:$0xff] (!%p184_p10)  ;;  %v385_v15 = vld [vmem:[%s2038_s1 + $0x40] sm:$0xff] (!%p184_p10)  ;;  %s217_s7 = sand.u32 (!%p184_p10), 1, %s1436_s13  }
  0x11   : > { %1259 = vmatpush1.bf16.msra.mxu0 (!%p184_p10), %v1258_v4  ;;  %1305 = vmatpush1.bf16.msra.mxu1 (!%p184_p10), %v1258_v4  ;;  %v1267_v14 = vpack.c.bf16 (!%p184_p10), %v384_v11, %v383_v10  ;;  %v386_v16 = vld [vmem:[%s2038_s1 + $0x48] sm:$0xff] (!%p184_p10)  ;;  %v387_v18 = vld [vmem:[%s2038_s1 + $0x50] sm:$0xff] (!%p184_p10)  ;;  %v388_v19 = vld [vmem:[%s2038_s1 + $0x58] sm:$0xff] (!%p184_p10) }
  0x12   : > { %1260 = vmatprep.subr.bf16.mxu0 (!%p184_p10), %v1454_v3  ;;  %1294 = vmatprep.subr.bf16.mxu1 (!%p184_p10), %v1454_v3  ;;  %v1270_v17 = vpack.c.bf16 (!%p184_p10), %v386_v16, %v385_v15  ;;  %v1273_v20 = vpack.c.bf16 (!%p184_p10), %v388_v19, %v387_v18  ;;  %v389_v21 = vld [vmem:[%s2038_s1 + $0x60] sm:$0xff] (!%p184_p10)  ;;  %v390_v22 = vld [vmem:[%s2038_s1 + $0x68] sm:$0xff] (!%p184_p10)  ;;  %v391_v24 = vld [vmem:[%s2038_s1 + $0x70] sm:$0xff] (!%p184_p10) }
  0x13   : > { %v1276_v23 = vpack.c.bf16 (!%p184_p10), %v390_v22, %v389_v21  ;;  %v392_v25 = vld [vmem:[%s2038_s1 + $0x78] sm:$0xff] (!%p184_p10)  ;;  %v393_v27 = vld [vmem:[%s2038_s1 + $0x80] sm:$0xff] (!%p184_p10)  ;;  %v394_v28 = vld [vmem:[%s2038_s1 + $0x88] sm:$0xff] (!%p184_p10) }
  0x14   : > { %v1279_v26 = vpack.c.bf16 (!%p184_p10), %v392_v25, %v391_v24  ;;  %v1282_v29 = vpack.c.bf16 (!%p184_p10), %v394_v28, %v393_v27  ;;  %v395_v30 = vld [vmem:[%s2038_s1 + $0x90] sm:$0xff] (!%p184_p10)  ;;  %v396_v31 = vld [vmem:[%s2038_s1 + $0x98] sm:$0xff] (!%p184_p10)  ;;  %v397_v33 = vld [vmem:[%s2038_s1 + $0xa0] sm:$0xff] (!%p184_p10) }
  0x15   : > { %1262 = vmatpush1.bf16.msra.mxu0 (!%p184_p10), %v1261_v6  ;;  %1306 = vmatpush1.bf16.msra.mxu1 (!%p184_p10), %v1261_v6  ;;  %v1285_v32 = vpack.c.bf16 (!%p184_p10), %v396_v31, %v395_v30  ;;  %v398_v34 = vld [vmem:[%s2038_s1 + $0xa8] sm:$0xff] (!%p184_p10)  ;;  %v399_v36 = vld [vmem:[%s2038_s1 + $0xb0] sm:$0xff] (!%p184_p10)  ;;  %v400_v37 = vld [vmem:[%s2038_s1 + $0xb8] sm:$0xff] (!%p184_p10) }
  0x16   : > { %s227_s8 = scalar_select %p226_p11, %s1543_s5, 124  ;;  %1263 = vmatprep.subr.bf16.mxu0 %v1454_v3  ;;  %1295 = vmatprep.subr.bf16.mxu1 %v1454_v3  ;;  %v1288_v35 = vpack.c.bf16 %v398_v34, %v397_v33  ;;  %v1291_v38 = vpack.c.bf16 %v400_v37, %v399_v36 }
  0x17   : > { %s1059_s18 = ssub.s32 (%p1518_p4), 125, %s1543_s5 }
  0x18   : > { %s1255_s19 = sshll.u32 %s227_s8, 4  ;;  %s1177_s8 = sshll.u32 %s217_s7, 9 }
  0x19   : > { %s1563_s26 = scalar_lea.vmem %s2037_s0, %s1255_s19  ;;  %1265 = vmatpush1.bf16.msra.mxu0 %v1264_v9  ;;  %1307 = vmatpush1.bf16.msra.mxu1 %v1264_v9  ;;  %s1841_s11 = scalar_lea.vmem [#allocation2], %s1177_s8 }
  0x1a   : > { %v250_v12 = vld [vmem:[%s1563_s26 + $0x8] sm:$0xff]  ;;  %1266 = vmatprep.subr.bf16.mxu0 %v1454_v3  ;;  %1296 = vmatprep.subr.bf16.mxu1 %v1454_v3  ;;  %v249_v39 = vld [vmem:[%s1563_s26] sm:$0xff]  ;;  %v252_v41 = vld [vmem:[%s1563_s26 + $0x18] sm:$0xff]  ;;  %p1060_p12 = scmp.lt.s32.totalorder (%p1518_p4), %s1059_s18, 64 }
  0x1b   : > { %v314_v13 = vld [vmem:[%s1563_s26 + $0x208] sm:$0xff]  ;;  %1182 = vmatprep.mubr.msk.f32.mxu0 %vm408_vm0, %v250_v12  ;;  %v313_v40 = vld [vmem:[%s1563_s26 + $0x200] sm:$0xff]  ;;  %v316_v42 = vld [vmem:[%s1563_s26 + $0x218] sm:$0xff] }
  0x1c   : > { %1214 = vmatprep.mubr.msk.f32.mxu1 %vm408_vm0, %v314_v13  ;;  %v251_v43 = vld [vmem:[%s1563_s26 + $0x10] sm:$0xff]  ;;  %v254_v45 = vld [vmem:[%s1563_s26 + $0x28] sm:$0xff]  ;;  %v253_v47 = vld [vmem:[%s1563_s26 + $0x20] sm:$0xff] }
  0x1d   : > { %1268 = vmatpush1.bf16.msra.mxu0 %v1267_v14  ;;  %1308 = vmatpush1.bf16.msra.mxu1 %v1267_v14  ;;  %v315_v44 = vld [vmem:[%s1563_s26 + $0x210] sm:$0xff]  ;;  %v318_v46 = vld [vmem:[%s1563_s26 + $0x228] sm:$0xff]  ;;  %v317_v48 = vld [vmem:[%s1563_s26 + $0x220] sm:$0xff] }
  0x1e   : > { %1269 = vmatprep.subr.bf16.mxu0 %v1454_v3  ;;  %1297 = vmatprep.subr.bf16.mxu1 %v1454_v3  ;;  %v256_v49 = vld [vmem:[%s1563_s26 + $0x38] sm:$0xff]  ;;  %v255_v51 = vld [vmem:[%s1563_s26 + $0x30] sm:$0xff]  ;;  %v258_v53 = vld [vmem:[%s1563_s26 + $0x48] sm:$0xff] }
  0x1f   : > { %v320_v50 = vld [vmem:[%s1563_s26 + $0x238] sm:$0xff]  ;;  %v319_v52 = vld [vmem:[%s1563_s26 + $0x230] sm:$0xff]  ;;  %v322_v54 = vld [vmem:[%s1563_s26 + $0x248] sm:$0xff] }
  0x20   : > { %v257_v55 = vld [vmem:[%s1563_s26 + $0x40] sm:$0xff]  ;;  %v260_v57 = vld [vmem:[%s1563_s26 + $0x58] sm:$0xff]  ;;  %v259_v59 = vld [vmem:[%s1563_s26 + $0x50] sm:$0xff] }
  0x21   : > { %1271 = vmatpush1.bf16.msra.mxu0 %v1270_v17  ;;  %1309 = vmatpush1.bf16.msra.mxu1 %v1270_v17  ;;  %v321_v56 = vld [vmem:[%s1563_s26 + $0x240] sm:$0xff]  ;;  %v324_v58 = vld [vmem:[%s1563_s26 + $0x258] sm:$0xff]  ;;  %v323_v60 = vld [vmem:[%s1563_s26 + $0x250] sm:$0xff] }
  0x22   : > { %1272 = vmatprep.subr.bf16.mxu0 %v1454_v3  ;;  %1298 = vmatprep.subr.bf16.mxu1 %v1454_v3  ;;  %v262_v61 = vld [vmem:[%s1563_s26 + $0x68] sm:$0xff]  ;;  %v261_v63 = vld [vmem:[%s1563_s26 + $0x60] sm:$0xff]  ;;  %v264_v1 = vld [vmem:[%s1563_s26 + $0x78] sm:$0xff] }
  0x23   : > { %v326_v62 = vld [vmem:[%s1563_s26 + $0x268] sm:$0xff]  ;;  %v325_v0 = vld [vmem:[%s1563_s26 + $0x260] sm:$0xff]  ;;  %v328_v2 = vld [vmem:[%s1563_s26 + $0x278] sm:$0xff] }
  0x24   : > { %v327_v4 = vld [vmem:[%s1563_s26 + $0x270] sm:$0xff]  ;;  %v266_v5 = vld [vmem:[%s1563_s26 + $0x88] sm:$0xff]  ;;  %v265_v7 = vld [vmem:[%s1563_s26 + $0x80] sm:$0xff] }
  0x25   : > { %1274 = vmatpush1.bf16.msra.mxu0 %v1273_v20  ;;  %1310 = vmatpush1.bf16.msra.mxu1 %v1273_v20  ;;  %v330_v6 = vld [vmem:[%s1563_s26 + $0x288] sm:$0xff]  ;;  %v329_v8 = vld [vmem:[%s1563_s26 + $0x280] sm:$0xff]  ;;  %v268_v9 = vld [vmem:[%s1563_s26 + $0x98] sm:$0xff] }
  0x26   : > { %1275 = vmatprep.subr.bf16.mxu0 %v1454_v3  ;;  %1299 = vmatprep.subr.bf16.mxu1 %v1454_v3  ;;  %v332_v10 = vld [vmem:[%s1563_s26 + $0x298] sm:$0xff]  ;;  %v267_v11 = vld [vmem:[%s1563_s26 + $0x90] sm:$0xff]  ;;  %v270_v13 = vld [vmem:[%s1563_s26 + $0xa8] sm:$0xff] }
  0x27   : > { %v331_v12 = vld [vmem:[%s1563_s26 + $0x290] sm:$0xff]  ;;  %v334_v14 = vld [vmem:[%s1563_s26 + $0x2a8] sm:$0xff]  ;;  %v269_v15 = vld [vmem:[%s1563_s26 + $0xa0] sm:$0xff] }
  0x28   : > { %v333_v16 = vld [vmem:[%s1563_s26 + $0x2a0] sm:$0xff]  ;;  %v272_v17 = vld [vmem:[%s1563_s26 + $0xb8] sm:$0xff]  ;;  %v271_v19 = vld [vmem:[%s1563_s26 + $0xb0] sm:$0xff] }
  0x29   : > { %1277 = vmatpush1.bf16.msra.mxu0 %v1276_v23  ;;  %1311 = vmatpush1.bf16.msra.mxu1 %v1276_v23  ;;  %v336_v18 = vld [vmem:[%s1563_s26 + $0x2b8] sm:$0xff]  ;;  %v335_v20 = vld [vmem:[%s1563_s26 + $0x2b0] sm:$0xff]  ;;  %v274_v21 = vld [vmem:[%s1563_s26 + $0xc8] sm:$0xff] }
  0x2a   : > { %1278 = vmatprep.subr.bf16.mxu0 %v1454_v3  ;;  %1300 = vmatprep.subr.bf16.mxu1 %v1454_v3  ;;  %v338_v22 = vld [vmem:[%s1563_s26 + $0x2c8] sm:$0xff]  ;;  %v273_v23 = vld [vmem:[%s1563_s26 + $0xc0] sm:$0xff]  ;;  %v276_v25 = vld [vmem:[%s1563_s26 + $0xd8] sm:$0xff] }
  0x2b   : > { %v337_v24 = vld [vmem:[%s1563_s26 + $0x2c0] sm:$0xff]  ;;  %v275_v27 = vld [vmem:[%s1563_s26 + $0xd0] sm:$0xff]  ;;  %v342_v30 = vld [vmem:[%s1563_s26 + $0x2e8] sm:$0xff] }
  0x2c   : > { %v339_v28 = vld [vmem:[%s1563_s26 + $0x2d0] sm:$0xff]  ;;  %v277_v31 = vld [vmem:[%s1563_s26 + $0xe0] sm:$0xff]  ;;  %v280_v33 = vld [vmem:[%s1563_s26 + $0xf8] sm:$0xff] }
  0x2d   : > { %1280 = vmatpush1.bf16.msra.mxu0 %v1279_v26  ;;  %1312 = vmatpush1.bf16.msra.mxu1 %v1279_v26  ;;  %v340_v26 = vld [vmem:[%s1563_s26 + $0x2d8] sm:$0xff]  ;;  %v343_v36 = vld [vmem:[%s1563_s26 + $0x2f0] sm:$0xff]  ;;  %v282_v37 = vld [vmem:[%s1563_s26 + $0x108] sm:$0xff] }
  0x2e   : > { %1281 = vmatprep.subr.bf16.mxu0 %v1454_v3  ;;  %1301 = vmatprep.subr.bf16.mxu1 %v1454_v3  ;;  %v344_v34 = vld [vmem:[%s1563_s26 + $0x2f8] sm:$0xff] }
  0x31   : > { %1283 = vmatpush1.bf16.msra.mxu0 %v1282_v29  ;;  %1313 = vmatpush1.bf16.msra.mxu1 %v1282_v29  ;;  %v278_v29 = vld [vmem:[%s1563_s26 + $0xe8] sm:$0xff] }
  0x32   : > { %1284 = vmatprep.subr.bf16.mxu0 %v1454_v3  ;;  %1302 = vmatprep.subr.bf16.mxu1 %v1454_v3 }
  0x35   : > { %1286 = vmatpush1.bf16.msra.mxu0 %v1285_v32  ;;  %1314 = vmatpush1.bf16.msra.mxu1 %v1285_v32  ;;  %v341_v32 = vld [vmem:[%s1563_s26 + $0x2e0] sm:$0xff] }
  0x36   : > { %1287 = vmatprep.subr.bf16.mxu0 %v1454_v3  ;;  %1303 = vmatprep.subr.bf16.mxu1 %v1454_v3 }
  0x39   : > { %1289 = vmatpush1.bf16.msra.mxu0 %v1288_v35  ;;  %1315 = vmatpush1.bf16.msra.mxu1 %v1288_v35  ;;  %v279_v35 = vld [vmem:[%s1563_s26 + $0xf0] sm:$0xff] }
  0x3a   : > { %1290 = vmatprep.subr.bf16.mxu0 %v1454_v3  ;;  %1304 = vmatprep.subr.bf16.mxu1 %v1454_v3  ;;  %v263_v3 = vld [vmem:[%s1563_s26 + $0x70] sm:$0xff] }
  0x3d   : > { %1292 = vmatpush1.bf16.msra.mxu0 %v1291_v38  ;;  %1316 = vmatpush1.bf16.msra.mxu1 %v1291_v38  ;;  %v346_v38 = vld [vmem:[%s1563_s26 + $0x308] sm:$0xff] }
  0x40   : > { %666 = vmatmul.mubr.f32.vlgmr.msra.gmra.mrb[0].mxu0 %v249_v39  ;;  %826 = vmatmul.mubr.f32.vlgmr.msra.gmra.mrb[0].mxu1 %v313_v40  ;;  %v281_v39 = vld [vmem:[%s1563_s26 + $0x100] sm:$0xff] }
  0x41   : > { %1183 = vmatprep.mubr.msk.f32.mxu0 %vm408_vm0, %v252_v41  ;;  %1215 = vmatprep.mubr.msk.f32.mxu1 %vm408_vm0, %v316_v42  ;;  %v345_v40 = vld [vmem:[%s1563_s26 + $0x300] sm:$0xff]  ;;  %v284_v41 = vld [vmem:[%s1563_s26 + $0x118] sm:$0xff] }
  0x42   : > { %v348_v42 = vld [vmem:[%s1563_s26 + $0x318] sm:$0xff] }
  0x44   : > { %671 = vmatmul.mubr.f32.gmra.mrb[2].mxu0 %v251_v43  ;;  %831 = vmatmul.mubr.f32.gmra.mrb[2].mxu1 %v315_v44  ;;  %v283_v43 = vld [vmem:[%s1563_s26 + $0x110] sm:$0xff] }
  0x45   : > { %1184 = vmatprep.mubr.msk.f32.mxu0 %vm408_vm0, %v254_v45  ;;  %1216 = vmatprep.mubr.msk.f32.mxu1 %vm408_vm0, %v318_v46  ;;  %v347_v44 = vld [vmem:[%s1563_s26 + $0x310] sm:$0xff]  ;;  %v286_v45 = vld [vmem:[%s1563_s26 + $0x128] sm:$0xff] }
  0x46   : > { %v350_v46 = vld [vmem:[%s1563_s26 + $0x328] sm:$0xff] }
  0x48   : > { %676 = vmatmul.mubr.f32.gmra.mrb[4].mxu0 %v253_v47  ;;  %836 = vmatmul.mubr.f32.gmra.mrb[4].mxu1 %v317_v48  ;;  %v285_v47 = vld [vmem:[%s1563_s26 + $0x120] sm:$0xff] }
  0x49   : > { %1185 = vmatprep.mubr.msk.f32.mxu0 %vm408_vm0, %v256_v49  ;;  %1217 = vmatprep.mubr.msk.f32.mxu1 %vm408_vm0, %v320_v50  ;;  %v349_v48 = vld [vmem:[%s1563_s26 + $0x320] sm:$0xff]  ;;  %v288_v49 = vld [vmem:[%s1563_s26 + $0x138] sm:$0xff] }
  0x4a   : > { %v352_v50 = vld [vmem:[%s1563_s26 + $0x338] sm:$0xff] }
  0x4c   : > { %681 = vmatmul.mubr.f32.gmra.mrb[6].mxu0 %v255_v51  ;;  %841 = vmatmul.mubr.f32.gmra.mrb[6].mxu1 %v319_v52  ;;  %v287_v51 = vld [vmem:[%s1563_s26 + $0x130] sm:$0xff] }
  0x4d   : > { %1186 = vmatprep.mubr.msk.f32.mxu0 %vm408_vm0, %v258_v53  ;;  %1218 = vmatprep.mubr.msk.f32.mxu1 %vm408_vm0, %v322_v54  ;;  %v351_v52 = vld [vmem:[%s1563_s26 + $0x330] sm:$0xff]  ;;  %v290_v53 = vld [vmem:[%s1563_s26 + $0x148] sm:$0xff] }
  0x4e   : > { %v354_v54 = vld [vmem:[%s1563_s26 + $0x348] sm:$0xff] }
  0x50   : > { %686 = vmatmul.mubr.f32.gmra.mrb[8].mxu0 %v257_v55  ;;  %846 = vmatmul.mubr.f32.gmra.mrb[8].mxu1 %v321_v56  ;;  %v289_v55 = vld [vmem:[%s1563_s26 + $0x140] sm:$0xff] }
  0x51   : > { %1187 = vmatprep.mubr.msk.f32.mxu0 %vm408_vm0, %v260_v57  ;;  %1219 = vmatprep.mubr.msk.f32.mxu1 %vm408_vm0, %v324_v58  ;;  %v353_v56 = vld [vmem:[%s1563_s26 + $0x340] sm:$0xff]  ;;  %v292_v57 = vld [vmem:[%s1563_s26 + $0x158] sm:$0xff] }
  0x52   : > { %v356_v58 = vld [vmem:[%s1563_s26 + $0x358] sm:$0xff] }
  0x54   : > { %691 = vmatmul.mubr.f32.gmra.mrb[10].mxu0 %v259_v59  ;;  %851 = vmatmul.mubr.f32.gmra.mrb[10].mxu1 %v323_v60  ;;  %v291_v59 = vld [vmem:[%s1563_s26 + $0x150] sm:$0xff] }
  0x55   : > { %1188 = vmatprep.mubr.msk.f32.mxu0 %vm408_vm0, %v262_v61  ;;  %1220 = vmatprep.mubr.msk.f32.mxu1 %vm408_vm0, %v326_v62  ;;  %v355_v60 = vld [vmem:[%s1563_s26 + $0x350] sm:$0xff]  ;;  %v294_v61 = vld [vmem:[%s1563_s26 + $0x168] sm:$0xff] }
  0x56   : > { %v358_v62 = vld [vmem:[%s1563_s26 + $0x368] sm:$0xff] }
  0x58   : > { %696 = vmatmul.mubr.f32.gmra.mrb[12].mxu0 %v261_v63  ;;  %856 = vmatmul.mubr.f32.gmra.mrb[12].mxu1 %v325_v0  ;;  %v293_v63 = vld [vmem:[%s1563_s26 + $0x160] sm:$0xff] }
  0x59   : > { %1189 = vmatprep.mubr.msk.f32.mxu0 %vm408_vm0, %v264_v1  ;;  %1221 = vmatprep.mubr.msk.f32.mxu1 %vm408_vm0, %v328_v2  ;;  %v357_v0 = vld [vmem:[%s1563_s26 + $0x360] sm:$0xff]  ;;  %v296_v1 = vld [vmem:[%s1563_s26 + $0x178] sm:$0xff] }
  0x5a   : > { %v360_v2 = vld [vmem:[%s1563_s26 + $0x378] sm:$0xff] }
  0x5c   : > { %701 = vmatmul.mubr.f32.gmra.mrb[14].mxu0 %v263_v3  ;;  %861 = vmatmul.mubr.f32.gmra.mrb[14].mxu1 %v327_v4  ;;  %v295_v3 = vld [vmem:[%s1563_s26 + $0x170] sm:$0xff] }
  0x5d   : > { %1190 = vmatprep.mubr.msk.f32.mxu0 %vm408_vm0, %v266_v5  ;;  %1222 = vmatprep.mubr.msk.f32.mxu1 %vm408_vm0, %v330_v6  ;;  %v359_v4 = vld [vmem:[%s1563_s26 + $0x370] sm:$0xff]  ;;  %v298_v5 = vld [vmem:[%s1563_s26 + $0x188] sm:$0xff] }
  0x5e   : > { %v362_v6 = vld [vmem:[%s1563_s26 + $0x388] sm:$0xff] }
  0x60   : > { %706 = vmatmul.mubr.f32.gmra.mrb[16].mxu0 %v265_v7  ;;  %866 = vmatmul.mubr.f32.gmra.mrb[16].mxu1 %v329_v8  ;;  %v297_v7 = vld [vmem:[%s1563_s26 + $0x180] sm:$0xff] }
  0x61   : > { %1191 = vmatprep.mubr.msk.f32.mxu0 %vm408_vm0, %v268_v9  ;;  %1223 = vmatprep.mubr.msk.f32.mxu1 %vm408_vm0, %v332_v10  ;;  %v361_v8 = vld [vmem:[%s1563_s26 + $0x380] sm:$0xff]  ;;  %v300_v9 = vld [vmem:[%s1563_s26 + $0x198] sm:$0xff] }
  0x62   : > { %v364_v10 = vld [vmem:[%s1563_s26 + $0x398] sm:$0xff] }
  0x64   : > { %711 = vmatmul.mubr.f32.gmra.mrb[18].mxu0 %v267_v11  ;;  %871 = vmatmul.mubr.f32.gmra.mrb[18].mxu1 %v331_v12  ;;  %v299_v11 = vld [vmem:[%s1563_s26 + $0x190] sm:$0xff] }
  0x65   : > { %1192 = vmatprep.mubr.msk.f32.mxu0 %vm408_vm0, %v270_v13  ;;  %1224 = vmatprep.mubr.msk.f32.mxu1 %vm408_vm0, %v334_v14  ;;  %v363_v12 = vld [vmem:[%s1563_s26 + $0x390] sm:$0xff]  ;;  %v302_v13 = vld [vmem:[%s1563_s26 + $0x1a8] sm:$0xff] }
  0x66   : > { %v366_v14 = vld [vmem:[%s1563_s26 + $0x3a8] sm:$0xff] }
  0x68   : > { %716 = vmatmul.mubr.f32.gmra.mrb[20].mxu0 %v269_v15  ;;  %876 = vmatmul.mubr.f32.gmra.mrb[20].mxu1 %v333_v16  ;;  %v301_v15 = vld [vmem:[%s1563_s26 + $0x1a0] sm:$0xff] }
  0x69   : > { %1193 = vmatprep.mubr.msk.f32.mxu0 %vm408_vm0, %v272_v17  ;;  %1225 = vmatprep.mubr.msk.f32.mxu1 %vm408_vm0, %v336_v18  ;;  %v365_v16 = vld [vmem:[%s1563_s26 + $0x3a0] sm:$0xff]  ;;  %v304_v17 = vld [vmem:[%s1563_s26 + $0x1b8] sm:$0xff] }
  0x6a   : > { %v368_v18 = vld [vmem:[%s1563_s26 + $0x3b8] sm:$0xff] }
  0x6c   : > { %721 = vmatmul.mubr.f32.gmra.mrb[22].mxu0 %v271_v19  ;;  %881 = vmatmul.mubr.f32.gmra.mrb[22].mxu1 %v335_v20  ;;  %v303_v19 = vld [vmem:[%s1563_s26 + $0x1b0] sm:$0xff] }
  0x6d   : > { %1194 = vmatprep.mubr.msk.f32.mxu0 %vm408_vm0, %v274_v21  ;;  %1226 = vmatprep.mubr.msk.f32.mxu1 %vm408_vm0, %v338_v22  ;;  %v367_v20 = vld [vmem:[%s1563_s26 + $0x3b0] sm:$0xff]  ;;  %v306_v21 = vld [vmem:[%s1563_s26 + $0x1c8] sm:$0xff] }
  0x6e   : > { %v370_v22 = vld [vmem:[%s1563_s26 + $0x3c8] sm:$0xff] }
  0x70   : > { %726 = vmatmul.mubr.f32.gmra.mrb[24].mxu0 %v273_v23  ;;  %886 = vmatmul.mubr.f32.gmra.mrb[24].mxu1 %v337_v24  ;;  %v305_v23 = vld [vmem:[%s1563_s26 + $0x1c0] sm:$0xff] }
  0x71   : > { %1195 = vmatprep.mubr.msk.f32.mxu0 %vm408_vm0, %v276_v25  ;;  %1227 = vmatprep.mubr.msk.f32.mxu1 %vm408_vm0, %v340_v26  ;;  %v369_v24 = vld [vmem:[%s1563_s26 + $0x3c0] sm:$0xff]  ;;  %v308_v25 = vld [vmem:[%s1563_s26 + $0x1d8] sm:$0xff] }
  0x72   : > { %v372_v26 = vld [vmem:[%s1563_s26 + $0x3d8] sm:$0xff] }
  0x74   : > { %731 = vmatmul.mubr.f32.gmra.mrb[26].mxu0 %v275_v27  ;;  %891 = vmatmul.mubr.f32.gmra.mrb[26].mxu1 %v339_v28  ;;  %v307_v27 = vld [vmem:[%s1563_s26 + $0x1d0] sm:$0xff] }
  0x75   : > { %1196 = vmatprep.mubr.msk.f32.mxu0 %vm408_vm0, %v278_v29  ;;  %1228 = vmatprep.mubr.msk.f32.mxu1 %vm408_vm0, %v342_v30  ;;  %v371_v28 = vld [vmem:[%s1563_s26 + $0x3d0] sm:$0xff]  ;;  %v310_v29 = vld [vmem:[%s1563_s26 + $0x1e8] sm:$0xff] }
  0x76   : > { %v374_v30 = vld [vmem:[%s1563_s26 + $0x3e8] sm:$0xff] }
  0x78   : > { %736 = vmatmul.mubr.f32.gmra.mrb[28].mxu0 %v277_v31  ;;  %896 = vmatmul.mubr.f32.gmra.mrb[28].mxu1 %v341_v32  ;;  %v309_v31 = vld [vmem:[%s1563_s26 + $0x1e0] sm:$0xff] }
  0x79   : > { %1197 = vmatprep.mubr.msk.f32.mxu0 %vm408_vm0, %v280_v33  ;;  %1229 = vmatprep.mubr.msk.f32.mxu1 %vm408_vm0, %v344_v34  ;;  %v373_v32 = vld [vmem:[%s1563_s26 + $0x3e0] sm:$0xff]  ;;  %v312_v33 = vld [vmem:[%s1563_s26 + $0x1f8] sm:$0xff] }
  0x7a   : > { %v376_v34 = vld [vmem:[%s1563_s26 + $0x3f8] sm:$0xff] }
  0x7c   : > { %741 = vmatmul.mubr.f32.gmra.mrb[30].mxu0 %v279_v35  ;;  %901 = vmatmul.mubr.f32.gmra.mrb[30].mxu1 %v343_v36  ;;  %v311_v35 = vld [vmem:[%s1563_s26 + $0x1f0] sm:$0xff] }
  0x7d   : > { %1198 = vmatprep.mubr.msk.f32.mxu0 %vm408_vm0, %v282_v37  ;;  %1230 = vmatprep.mubr.msk.f32.mxu1 %vm408_vm0, %v346_v38  ;;  %v375_v36 = vld [vmem:[%s1563_s26 + $0x3f0] sm:$0xff]  ;;  %v1837_v37 = vld [vmem:[%s2039_s2] ss:$0 sm:$0xff]  ;;  %s1971_s26 = scalar_lea.sflag [#allocation3], %s217_s7 }
  0x80   : > { %746 = vmatmul.mubr.f32.gmra.mrb[32].mxu0 %v281_v39  ;;  %906 = vmatmul.mubr.f32.gmra.mrb[32].mxu1 %v345_v40 }
  0x81   : > { %1199 = vmatprep.mubr.msk.f32.mxu0 %vm408_vm0, %v284_v41  ;;  %1231 = vmatprep.mubr.msk.f32.mxu1 %vm408_vm0, %v348_v42 }
  0x84   : > { %751 = vmatmul.mubr.f32.gmra.mrb[34].mxu0 %v283_v43  ;;  %911 = vmatmul.mubr.f32.gmra.mrb[34].mxu1 %v347_v44 }
  0x85   : > { %1200 = vmatprep.mubr.msk.f32.mxu0 %vm408_vm0, %v286_v45  ;;  %1232 = vmatprep.mubr.msk.f32.mxu1 %vm408_vm0, %v350_v46 }
  0x88   : > { %756 = vmatmul.mubr.f32.gmra.mrb[36].mxu0 %v285_v47  ;;  %916 = vmatmul.mubr.f32.gmra.mrb[36].mxu1 %v349_v48 }
  0x89   : > { %1201 = vmatprep.mubr.msk.f32.mxu0 %vm408_vm0, %v288_v49  ;;  %1233 = vmatprep.mubr.msk.f32.mxu1 %vm408_vm0, %v352_v50 }
  0x8c   : > { %761 = vmatmul.mubr.f32.gmra.mrb[38].mxu0 %v287_v51  ;;  %921 = vmatmul.mubr.f32.gmra.mrb[38].mxu1 %v351_v52 }
  0x8d   : > { %1202 = vmatprep.mubr.msk.f32.mxu0 %vm408_vm0, %v290_v53  ;;  %1234 = vmatprep.mubr.msk.f32.mxu1 %vm408_vm0, %v354_v54 }
  0x90   : > { %766 = vmatmul.mubr.f32.gmra.mrb[40].mxu0 %v289_v55  ;;  %926 = vmatmul.mubr.f32.gmra.mrb[40].mxu1 %v353_v56 }
  0x91   : > { %1203 = vmatprep.mubr.msk.f32.mxu0 %vm408_vm0, %v292_v57  ;;  %1235 = vmatprep.mubr.msk.f32.mxu1 %vm408_vm0, %v356_v58 }
  0x94   : > { %771 = vmatmul.mubr.f32.gmra.mrb[42].mxu0 %v291_v59  ;;  %931 = vmatmul.mubr.f32.gmra.mrb[42].mxu1 %v355_v60 }
  0x95   : > { %1204 = vmatprep.mubr.msk.f32.mxu0 %vm408_vm0, %v294_v61  ;;  %1236 = vmatprep.mubr.msk.f32.mxu1 %vm408_vm0, %v358_v62 }
  0x98   : > { %776 = vmatmul.mubr.f32.gmra.mrb[44].mxu0 %v293_v63  ;;  %936 = vmatmul.mubr.f32.gmra.mrb[44].mxu1 %v357_v0 }
  0x99   : > { %1205 = vmatprep.mubr.msk.f32.mxu0 %vm408_vm0, %v296_v1  ;;  %1237 = vmatprep.mubr.msk.f32.mxu1 %vm408_vm0, %v360_v2 }
  0x9c   : > { %781 = vmatmul.mubr.f32.gmra.mrb[46].mxu0 %v295_v3  ;;  %941 = vmatmul.mubr.f32.gmra.mrb[46].mxu1 %v359_v4 }
  0x9d   : > { %1206 = vmatprep.mubr.msk.f32.mxu0 %vm408_vm0, %v298_v5  ;;  %1238 = vmatprep.mubr.msk.f32.mxu1 %vm408_vm0, %v362_v6 }
  0xa0   : > { %786 = vmatmul.mubr.f32.gmra.mrb[48].mxu0 %v297_v7  ;;  %946 = vmatmul.mubr.f32.gmra.mrb[48].mxu1 %v361_v8 }
  0xa1   : > { %1207 = vmatprep.mubr.msk.f32.mxu0 %vm408_vm0, %v300_v9  ;;  %1239 = vmatprep.mubr.msk.f32.mxu1 %vm408_vm0, %v364_v10 }
  0xa4   : > { %791 = vmatmul.mubr.f32.gmra.mrb[50].mxu0 %v299_v11  ;;  %951 = vmatmul.mubr.f32.gmra.mrb[50].mxu1 %v363_v12 }
  0xa5   : > { %1208 = vmatprep.mubr.msk.f32.mxu0 %vm408_vm0, %v302_v13  ;;  %1240 = vmatprep.mubr.msk.f32.mxu1 %vm408_vm0, %v366_v14 }
  0xa8   : > { %796 = vmatmul.mubr.f32.gmra.mrb[52].mxu0 %v301_v15  ;;  %956 = vmatmul.mubr.f32.gmra.mrb[52].mxu1 %v365_v16 }
  0xa9   : > { %1209 = vmatprep.mubr.msk.f32.mxu0 %vm408_vm0, %v304_v17  ;;  %1241 = vmatprep.mubr.msk.f32.mxu1 %vm408_vm0, %v368_v18 }
  0xac   : > { %801 = vmatmul.mubr.f32.gmra.mrb[54].mxu0 %v303_v19  ;;  %961 = vmatmul.mubr.f32.gmra.mrb[54].mxu1 %v367_v20 }
  0xad   : > { %1210 = vmatprep.mubr.msk.f32.mxu0 %vm408_vm0, %v306_v21  ;;  %1242 = vmatprep.mubr.msk.f32.mxu1 %vm408_vm0, %v370_v22 }
  0xb0   : > { %806 = vmatmul.mubr.f32.gmra.mrb[56].mxu0 %v305_v23  ;;  %966 = vmatmul.mubr.f32.gmra.mrb[56].mxu1 %v369_v24 }
  0xb1   : > { %1211 = vmatprep.mubr.msk.f32.mxu0 %vm408_vm0, %v308_v25  ;;  %1243 = vmatprep.mubr.msk.f32.mxu1 %vm408_vm0, %v372_v26 }
  0xb4   : > { %811 = vmatmul.mubr.f32.gmra.mrb[58].mxu0 %v307_v27  ;;  %971 = vmatmul.mubr.f32.gmra.mrb[58].mxu1 %v371_v28 }
  0xb5   : > { %1212 = vmatprep.mubr.msk.f32.mxu0 %vm408_vm0, %v310_v29  ;;  %1244 = vmatprep.mubr.msk.f32.mxu1 %vm408_vm0, %v374_v30 }
  0xb8   : > { %816 = vmatmul.mubr.f32.gmra.mrb[60].mxu0 %v309_v31  ;;  %976 = vmatmul.mubr.f32.gmra.mrb[60].mxu1 %v373_v32 }
  0xb9   : > { %1213 = vmatprep.mubr.msk.f32.mxu0 %vm408_vm0, %v312_v33  ;;  %1245 = vmatprep.mubr.msk.f32.mxu1 %vm408_vm0, %v376_v34 }
  0xbc   : > { %821 = vmatmul.mubr.f32.gmra.mrb[62].mxu0 %v311_v35  ;;  %981 = vmatmul.mubr.f32.gmra.mrb[62].mxu1 %v375_v36 }
 0x113   : > { %v667_v38 = vpop.f32.mrb[0].mxu0  ;;  %v827_v39 = vpop.f32.mrb[0].mxu1 }
 0x114   : > { %v668_v40 = vadd.f32 %v1837_v37, %v667_v38  ;;  %v828_v41 = vadd.f32 %v1837_v37, %v827_v39  ;;  %v669_v42 = vpop.f32.mrb[1].mxu0  ;;  %v829_v43 = vpop.f32.mrb[1].mxu1 }
 0x116   : > { %986 = vst [vmem:[%s1841_s11] sm:$0xff] %v668_v40  ;;  %1018 = vst [vmem:[%s1841_s11 + $0x100] sm:$0xff] %v828_v41 }
 0x117   : > { %v672_v44 = vpop.f32.mrb[2].mxu0  ;;  %v832_v45 = vpop.f32.mrb[2].mxu1 }
 0x118   : > { %v673_v46 = vadd.f32 %v1837_v37, %v672_v44  ;;  %v833_v47 = vadd.f32 %v1837_v37, %v832_v45  ;;  %v674_v48 = vpop.f32.mrb[3].mxu0  ;;  %v834_v49 = vpop.f32.mrb[3].mxu1 }
 0x11a   : > { %987 = vst [vmem:[%s1841_s11 + $0x8] sm:$0xff] %v673_v46  ;;  %1019 = vst [vmem:[%s1841_s11 + $0x108] sm:$0xff] %v833_v47 }
 0x11b   : > { %v677_v50 = vpop.f32.mrb[4].mxu0  ;;  %v837_v51 = vpop.f32.mrb[4].mxu1 }
 0x11c   : > { %v678_v52 = vadd.f32 %v1837_v37, %v677_v50  ;;  %v838_v53 = vadd.f32 %v1837_v37, %v837_v51  ;;  %v679_v54 = vpop.f32.mrb[5].mxu0  ;;  %v839_v55 = vpop.f32.mrb[5].mxu1 }
 0x11e   : > { %988 = vst [vmem:[%s1841_s11 + $0x10] sm:$0xff] %v678_v52  ;;  %1020 = vst [vmem:[%s1841_s11 + $0x110] sm:$0xff] %v838_v53 }
 0x11f   : > { %v682_v56 = vpop.f32.mrb[6].mxu0  ;;  %v842_v57 = vpop.f32.mrb[6].mxu1 }
 0x120   : > { %v683_v58 = vadd.f32 %v1837_v37, %v682_v56  ;;  %v843_v59 = vadd.f32 %v1837_v37, %v842_v57  ;;  %v684_v60 = vpop.f32.mrb[7].mxu0  ;;  %v844_v61 = vpop.f32.mrb[7].mxu1 }
 0x122   : > { %989 = vst [vmem:[%s1841_s11 + $0x18] sm:$0xff] %v683_v58  ;;  %1021 = vst [vmem:[%s1841_s11 + $0x118] sm:$0xff] %v843_v59 }
 0x123   : > { %v687_v62 = vpop.f32.mrb[8].mxu0  ;;  %v847_v63 = vpop.f32.mrb[8].mxu1 }
 0x124   : > { %v688_v0 = vadd.f32 %v1837_v37, %v687_v62  ;;  %v848_v1 = vadd.f32 %v1837_v37, %v847_v63  ;;  %v689_v2 = vpop.f32.mrb[9].mxu0  ;;  %v849_v3 = vpop.f32.mrb[9].mxu1 }
 0x126   : > { %990 = vst [vmem:[%s1841_s11 + $0x20] sm:$0xff] %v688_v0  ;;  %1022 = vst [vmem:[%s1841_s11 + $0x120] sm:$0xff] %v848_v1 }
 0x127   : > { %v692_v4 = vpop.f32.mrb[10].mxu0  ;;  %v852_v5 = vpop.f32.mrb[10].mxu1 }
 0x128   : > { %v693_v6 = vadd.f32 %v1837_v37, %v692_v4  ;;  %v853_v7 = vadd.f32 %v1837_v37, %v852_v5  ;;  %v694_v8 = vpop.f32.mrb[11].mxu0  ;;  %v854_v9 = vpop.f32.mrb[11].mxu1 }
 0x12a   : > { %991 = vst [vmem:[%s1841_s11 + $0x28] sm:$0xff] %v693_v6  ;;  %1023 = vst [vmem:[%s1841_s11 + $0x128] sm:$0xff] %v853_v7 }
 0x12b   : > { %v697_v10 = vpop.f32.mrb[12].mxu0  ;;  %v857_v11 = vpop.f32.mrb[12].mxu1 }
 0x12c   : > { %v698_v12 = vadd.f32 %v1837_v37, %v697_v10  ;;  %v858_v13 = vadd.f32 %v1837_v37, %v857_v11  ;;  %v699_v14 = vpop.f32.mrb[13].mxu0  ;;  %v859_v15 = vpop.f32.mrb[13].mxu1 }
 0x12e   : > { %992 = vst [vmem:[%s1841_s11 + $0x30] sm:$0xff] %v698_v12  ;;  %1024 = vst [vmem:[%s1841_s11 + $0x130] sm:$0xff] %v858_v13 }
 0x12f   : > { %v702_v16 = vpop.f32.mrb[14].mxu0  ;;  %v862_v17 = vpop.f32.mrb[14].mxu1 }
 0x130   : > { %v703_v18 = vadd.f32 %v1837_v37, %v702_v16  ;;  %v863_v19 = vadd.f32 %v1837_v37, %v862_v17  ;;  %v704_v20 = vpop.f32.mrb[15].mxu0  ;;  %v864_v21 = vpop.f32.mrb[15].mxu1 }
 0x132   : > { %993 = vst [vmem:[%s1841_s11 + $0x38] sm:$0xff] %v703_v18  ;;  %1025 = vst [vmem:[%s1841_s11 + $0x138] sm:$0xff] %v863_v19 }
 0x133   : > { %v707_v22 = vpop.f32.mrb[16].mxu0  ;;  %v867_v23 = vpop.f32.mrb[16].mxu1 }
 0x134   : > { %v708_v24 = vadd.f32 %v1837_v37, %v707_v22  ;;  %v868_v25 = vadd.f32 %v1837_v37, %v867_v23  ;;  %v709_v26 = vpop.f32.mrb[17].mxu0  ;;  %v869_v27 = vpop.f32.mrb[17].mxu1 }
 0x136   : > { %994 = vst [vmem:[%s1841_s11 + $0x40] sm:$0xff] %v708_v24  ;;  %1026 = vst [vmem:[%s1841_s11 + $0x140] sm:$0xff] %v868_v25 }
 0x137   : > { %v712_v28 = vpop.f32.mrb[18].mxu0  ;;  %v872_v29 = vpop.f32.mrb[18].mxu1 }
 0x138   : > { %v713_v30 = vadd.f32 %v1837_v37, %v712_v28  ;;  %v873_v31 = vadd.f32 %v1837_v37, %v872_v29  ;;  %v714_v32 = vpop.f32.mrb[19].mxu0  ;;  %v874_v33 = vpop.f32.mrb[19].mxu1 }
 0x13a   : > { %995 = vst [vmem:[%s1841_s11 + $0x48] sm:$0xff] %v713_v30  ;;  %1027 = vst [vmem:[%s1841_s11 + $0x148] sm:$0xff] %v873_v31 }
 0x13b   : > { %v717_v34 = vpop.f32.mrb[20].mxu0  ;;  %v877_v35 = vpop.f32.mrb[20].mxu1 }
 0x13c   : > { %v718_v36 = vadd.f32 %v1837_v37, %v717_v34  ;;  %v878_v38 = vadd.f32 %v1837_v37, %v877_v35  ;;  %v719_v39 = vpop.f32.mrb[21].mxu0  ;;  %v879_v40 = vpop.f32.mrb[21].mxu1 }
 0x13e   : > { %996 = vst [vmem:[%s1841_s11 + $0x50] sm:$0xff] %v718_v36  ;;  %1028 = vst [vmem:[%s1841_s11 + $0x150] sm:$0xff] %v878_v38 }
 0x13f   : > { %v722_v41 = vpop.f32.mrb[22].mxu0  ;;  %v882_v42 = vpop.f32.mrb[22].mxu1 }
 0x140   : > { %v723_v43 = vadd.f32 %v1837_v37, %v722_v41  ;;  %v883_v44 = vadd.f32 %v1837_v37, %v882_v42  ;;  %v724_v45 = vpop.f32.mrb[23].mxu0  ;;  %v884_v46 = vpop.f32.mrb[23].mxu1 }
 0x142   : > { %997 = vst [vmem:[%s1841_s11 + $0x58] sm:$0xff] %v723_v43  ;;  %1029 = vst [vmem:[%s1841_s11 + $0x158] sm:$0xff] %v883_v44 }
 0x143   : > { %v727_v47 = vpop.f32.mrb[24].mxu0  ;;  %v887_v48 = vpop.f32.mrb[24].mxu1 }
 0x144   : > { %v728_v49 = vadd.f32 %v1837_v37, %v727_v47  ;;  %v888_v50 = vadd.f32 %v1837_v37, %v887_v48  ;;  %v729_v51 = vpop.f32.mrb[25].mxu0  ;;  %v889_v52 = vpop.f32.mrb[25].mxu1 }
 0x146   : > { %998 = vst [vmem:[%s1841_s11 + $0x60] sm:$0xff] %v728_v49  ;;  %1030 = vst [vmem:[%s1841_s11 + $0x160] sm:$0xff] %v888_v50 }
 0x147   : > { %v732_v53 = vpop.f32.mrb[26].mxu0  ;;  %v892_v54 = vpop.f32.mrb[26].mxu1 }
 0x148   : > { %v733_v55 = vadd.f32 %v1837_v37, %v732_v53  ;;  %v893_v56 = vadd.f32 %v1837_v37, %v892_v54  ;;  %v734_v57 = vpop.f32.mrb[27].mxu0  ;;  %v894_v58 = vpop.f32.mrb[27].mxu1 }
 0x14a   : > { %999 = vst [vmem:[%s1841_s11 + $0x68] sm:$0xff] %v733_v55  ;;  %1031 = vst [vmem:[%s1841_s11 + $0x168] sm:$0xff] %v893_v56 }
 0x14b   : > { %v737_v59 = vpop.f32.mrb[28].mxu0  ;;  %v897_v60 = vpop.f32.mrb[28].mxu1 }
 0x14c   : > { %v738_v61 = vadd.f32 %v1837_v37, %v737_v59  ;;  %v898_v62 = vadd.f32 %v1837_v37, %v897_v60  ;;  %v739_v63 = vpop.f32.mrb[29].mxu0  ;;  %v899_v0 = vpop.f32.mrb[29].mxu1 }
 0x14e   : > { %1000 = vst [vmem:[%s1841_s11 + $0x70] sm:$0xff] %v738_v61  ;;  %1032 = vst [vmem:[%s1841_s11 + $0x170] sm:$0xff] %v898_v62 }
 0x14f   : > { %v742_v1 = vpop.f32.mrb[30].mxu0  ;;  %v902_v2 = vpop.f32.mrb[30].mxu1 }
 0x150   : > { %v743_v3 = vadd.f32 %v1837_v37, %v742_v1  ;;  %v903_v4 = vadd.f32 %v1837_v37, %v902_v2  ;;  %v744_v5 = vpop.f32.mrb[31].mxu0  ;;  %v904_v6 = vpop.f32.mrb[31].mxu1 }
 0x152   : > { %1001 = vst [vmem:[%s1841_s11 + $0x78] sm:$0xff] %v743_v3  ;;  %1033 = vst [vmem:[%s1841_s11 + $0x178] sm:$0xff] %v903_v4 }
 0x153   : > { %v747_v7 = vpop.f32.mrb[32].mxu0  ;;  %v907_v8 = vpop.f32.mrb[32].mxu1 }
 0x154   : > { %v748_v9 = vadd.f32 %v1837_v37, %v747_v7  ;;  %v908_v10 = vadd.f32 %v1837_v37, %v907_v8  ;;  %v749_v11 = vpop.f32.mrb[33].mxu0  ;;  %v909_v12 = vpop.f32.mrb[33].mxu1 }
 0x156   : > { %1002 = vst [vmem:[%s1841_s11 + $0x80] sm:$0xff] %v748_v9  ;;  %1034 = vst [vmem:[%s1841_s11 + $0x180] sm:$0xff] %v908_v10 }
 0x157   : > { %v752_v13 = vpop.f32.mrb[34].mxu0  ;;  %v912_v14 = vpop.f32.mrb[34].mxu1 }
 0x158   : > { %v753_v15 = vadd.f32 %v1837_v37, %v752_v13  ;;  %v913_v16 = vadd.f32 %v1837_v37, %v912_v14  ;;  %v754_v17 = vpop.f32.mrb[35].mxu0  ;;  %v914_v18 = vpop.f32.mrb[35].mxu1 }
 0x15a   : > { %1003 = vst [vmem:[%s1841_s11 + $0x88] sm:$0xff] %v753_v15  ;;  %1035 = vst [vmem:[%s1841_s11 + $0x188] sm:$0xff] %v913_v16 }
 0x15b   : > { %v757_v19 = vpop.f32.mrb[36].mxu0  ;;  %v917_v20 = vpop.f32.mrb[36].mxu1 }
 0x15c   : > { %v758_v21 = vadd.f32 %v1837_v37, %v757_v19  ;;  %v918_v22 = vadd.f32 %v1837_v37, %v917_v20  ;;  %v759_v23 = vpop.f32.mrb[37].mxu0  ;;  %v919_v24 = vpop.f32.mrb[37].mxu1 }
 0x15e   : > { %1004 = vst [vmem:[%s1841_s11 + $0x90] sm:$0xff] %v758_v21  ;;  %1036 = vst [vmem:[%s1841_s11 + $0x190] sm:$0xff] %v918_v22 }
 0x15f   : > { %v762_v25 = vpop.f32.mrb[38].mxu0  ;;  %v922_v26 = vpop.f32.mrb[38].mxu1 }
 0x160   : > { %v763_v27 = vadd.f32 %v1837_v37, %v762_v25  ;;  %v923_v28 = vadd.f32 %v1837_v37, %v922_v26  ;;  %v764_v29 = vpop.f32.mrb[39].mxu0  ;;  %v924_v30 = vpop.f32.mrb[39].mxu1 }
 0x162   : > { %1005 = vst [vmem:[%s1841_s11 + $0x98] sm:$0xff] %v763_v27  ;;  %1037 = vst [vmem:[%s1841_s11 + $0x198] sm:$0xff] %v923_v28 }
 0x163   : > { %v767_v31 = vpop.f32.mrb[40].mxu0  ;;  %v927_v32 = vpop.f32.mrb[40].mxu1 }
 0x164   : > { %v768_v33 = vadd.f32 %v1837_v37, %v767_v31  ;;  %v928_v34 = vadd.f32 %v1837_v37, %v927_v32  ;;  %v769_v35 = vpop.f32.mrb[41].mxu0  ;;  %v929_v36 = vpop.f32.mrb[41].mxu1 }
 0x166   : > { %1006 = vst [vmem:[%s1841_s11 + $0xa0] sm:$0xff] %v768_v33  ;;  %1038 = vst [vmem:[%s1841_s11 + $0x1a0] sm:$0xff] %v928_v34 }
 0x167   : > { %v772_v38 = vpop.f32.mrb[42].mxu0  ;;  %v932_v39 = vpop.f32.mrb[42].mxu1 }
 0x168   : > { %v773_v40 = vadd.f32 %v1837_v37, %v772_v38  ;;  %v933_v41 = vadd.f32 %v1837_v37, %v932_v39  ;;  %v774_v42 = vpop.f32.mrb[43].mxu0  ;;  %v934_v43 = vpop.f32.mrb[43].mxu1 }
 0x16a   : > { %1007 = vst [vmem:[%s1841_s11 + $0xa8] sm:$0xff] %v773_v40  ;;  %1039 = vst [vmem:[%s1841_s11 + $0x1a8] sm:$0xff] %v933_v41 }
 0x16b   : > { %v777_v44 = vpop.f32.mrb[44].mxu0  ;;  %v937_v45 = vpop.f32.mrb[44].mxu1 }
 0x16c   : > { %v778_v46 = vadd.f32 %v1837_v37, %v777_v44  ;;  %v938_v47 = vadd.f32 %v1837_v37, %v937_v45  ;;  %v779_v48 = vpop.f32.mrb[45].mxu0  ;;  %v939_v49 = vpop.f32.mrb[45].mxu1 }
 0x16e   : > { %1008 = vst [vmem:[%s1841_s11 + $0xb0] sm:$0xff] %v778_v46  ;;  %1040 = vst [vmem:[%s1841_s11 + $0x1b0] sm:$0xff] %v938_v47 }
 0x16f   : > { %v782_v50 = vpop.f32.mrb[46].mxu0  ;;  %v942_v51 = vpop.f32.mrb[46].mxu1 }
 0x170   : > { %v783_v52 = vadd.f32 %v1837_v37, %v782_v50  ;;  %v943_v53 = vadd.f32 %v1837_v37, %v942_v51  ;;  %v784_v54 = vpop.f32.mrb[47].mxu0  ;;  %v944_v55 = vpop.f32.mrb[47].mxu1 }
 0x172   : > { %1009 = vst [vmem:[%s1841_s11 + $0xb8] sm:$0xff] %v783_v52  ;;  %1041 = vst [vmem:[%s1841_s11 + $0x1b8] sm:$0xff] %v943_v53 }
 0x173   : > { %v787_v56 = vpop.f32.mrb[48].mxu0  ;;  %v947_v57 = vpop.f32.mrb[48].mxu1 }
 0x174   : > { %v788_v58 = vadd.f32 %v1837_v37, %v787_v56  ;;  %v948_v59 = vadd.f32 %v1837_v37, %v947_v57  ;;  %v789_v60 = vpop.f32.mrb[49].mxu0  ;;  %v949_v61 = vpop.f32.mrb[49].mxu1 }
 0x176   : > { %1010 = vst [vmem:[%s1841_s11 + $0xc0] sm:$0xff] %v788_v58  ;;  %1042 = vst [vmem:[%s1841_s11 + $0x1c0] sm:$0xff] %v948_v59 }
 0x177   : > { %v792_v62 = vpop.f32.mrb[50].mxu0  ;;  %v952_v63 = vpop.f32.mrb[50].mxu1 }
 0x178   : > { %v793_v0 = vadd.f32 %v1837_v37, %v792_v62  ;;  %v953_v1 = vadd.f32 %v1837_v37, %v952_v63  ;;  %v794_v2 = vpop.f32.mrb[51].mxu0  ;;  %v954_v3 = vpop.f32.mrb[51].mxu1 }
 0x17a   : > { %1011 = vst [vmem:[%s1841_s11 + $0xc8] sm:$0xff] %v793_v0  ;;  %1043 = vst [vmem:[%s1841_s11 + $0x1c8] sm:$0xff] %v953_v1 }
 0x17b   : > { %v797_v4 = vpop.f32.mrb[52].mxu0  ;;  %v957_v5 = vpop.f32.mrb[52].mxu1 }
 0x17c   : > { %v798_v6 = vadd.f32 %v1837_v37, %v797_v4  ;;  %v958_v7 = vadd.f32 %v1837_v37, %v957_v5  ;;  %v799_v8 = vpop.f32.mrb[53].mxu0  ;;  %v959_v9 = vpop.f32.mrb[53].mxu1 }
 0x17e   : > { %1012 = vst [vmem:[%s1841_s11 + $0xd0] sm:$0xff] %v798_v6  ;;  %1044 = vst [vmem:[%s1841_s11 + $0x1d0] sm:$0xff] %v958_v7 }
 0x17f   : > { %v802_v10 = vpop.f32.mrb[54].mxu0  ;;  %v962_v11 = vpop.f32.mrb[54].mxu1 }
 0x180   : > { %v803_v12 = vadd.f32 %v1837_v37, %v802_v10  ;;  %v963_v13 = vadd.f32 %v1837_v37, %v962_v11  ;;  %v804_v14 = vpop.f32.mrb[55].mxu0  ;;  %v964_v15 = vpop.f32.mrb[55].mxu1 }
 0x182   : > { %1013 = vst [vmem:[%s1841_s11 + $0xd8] sm:$0xff] %v803_v12  ;;  %1045 = vst [vmem:[%s1841_s11 + $0x1d8] sm:$0xff] %v963_v13 }
 0x183   : > { %v807_v16 = vpop.f32.mrb[56].mxu0  ;;  %v967_v17 = vpop.f32.mrb[56].mxu1 }
 0x184   : > { %v808_v18 = vadd.f32 %v1837_v37, %v807_v16  ;;  %v968_v19 = vadd.f32 %v1837_v37, %v967_v17  ;;  %v809_v20 = vpop.f32.mrb[57].mxu0  ;;  %v969_v21 = vpop.f32.mrb[57].mxu1 }
 0x186   : > { %1014 = vst [vmem:[%s1841_s11 + $0xe0] sm:$0xff] %v808_v18  ;;  %1046 = vst [vmem:[%s1841_s11 + $0x1e0] sm:$0xff] %v968_v19 }
 0x187   : > { %v812_v22 = vpop.f32.mrb[58].mxu0  ;;  %v972_v23 = vpop.f32.mrb[58].mxu1 }
 0x188   : > { %v813_v24 = vadd.f32 %v1837_v37, %v812_v22  ;;  %v973_v25 = vadd.f32 %v1837_v37, %v972_v23  ;;  %v814_v26 = vpop.f32.mrb[59].mxu0  ;;  %v974_v27 = vpop.f32.mrb[59].mxu1 }
 0x18a   : > { %1015 = vst [vmem:[%s1841_s11 + $0xe8] sm:$0xff] %v813_v24  ;;  %1047 = vst [vmem:[%s1841_s11 + $0x1e8] sm:$0xff] %v973_v25 }
 0x18b   : > { %v817_v28 = vpop.f32.mrb[60].mxu0  ;;  %v977_v29 = vpop.f32.mrb[60].mxu1 }
 0x18c   : > { %v818_v30 = vadd.f32 %v1837_v37, %v817_v28  ;;  %v978_v31 = vadd.f32 %v1837_v37, %v977_v29  ;;  %v819_v32 = vpop.f32.mrb[61].mxu0  ;;  %v979_v33 = vpop.f32.mrb[61].mxu1  ;;  %1057 = sbr.rel (!%p1518_p4) target bundleno = 431 (0x1af), region = 36 }
 0x18e   : > { %1016 = vst [vmem:[%s1841_s11 + $0xf0] sm:$0xff] %v818_v30  ;;  %1048 = vst [vmem:[%s1841_s11 + $0x1f0] sm:$0xff] %v978_v31 }
 0x18f   : > { %v822_v34 = vpop.f32.mrb[62].mxu0  ;;  %v982_v35 = vpop.f32.mrb[62].mxu1 }
 0x190   : > { %v823_v36 = vadd.f32 %v1837_v37, %v822_v34  ;;  %v983_v38 = vadd.f32 %v1837_v37, %v982_v35  ;;  %v824_v39 = vpop.f32.mrb[63].mxu0  ;;  %v984_v40 = vpop.f32.mrb[63].mxu1 }
 0x192   : > { %1017 = vst [vmem:[%s1841_s11 + $0xf8] sm:$0xff] %v823_v36  ;;  %1049 = vst [vmem:[%s1841_s11 + $0x1f8] sm:$0xff] %v983_v38 }
 0x193   : > { %s2051_s18 = smov (!%p1060_p12, %s1059_s18), 64 }
 0x194   : > { %s1976_s19 = sshll.u32 %s2051_s18, 7 }
 0x195   : > { %s1064_s21 = ssub.s32 8192, %s1976_s19 }
 0x196   : > { %1065 = vsyncadd %s1971_s26, %s1064_s21  ;;  %p1249_p13 = scmp.ne.s32.totalorder %s1976_s19, 0  ;;  %s1256_s23 = sshll.u32 %s1444_s15, 13 }
 0x197   : > { %s1985_s28 = scalar_lea.hbm %s2040_s3, %s1256_s23  ;;  %s1071_s5 = sshll.u32 %s1841_s11, 4  ;;  %s1988_s5 = int_to_ptr.vmem [resolvable:$true] %s1071_s5 }
 0x198   : > { %s1374_s29 = scalar_lea.vmem %s1988_s5, %s1976_s19  ;;  %s1455_s30 = smov [#allocation2]  }
 0x199   : > { %p1375_p0 = scmp.ne.s32.totalorder %s1988_s5, %s1374_s29  ;;  %s1378_s4 = sshll.u32 %s1455_s30, 4  ;;  %s1379_s4 = int_to_ptr.vmem [resolvable:$false] %s1378_s4 }
 0x19a   : > { %s1380_s15 = scalar_lea.vmem %s1379_s4, 16384  ;;  %p1381_p3 = scmp.lt.s32.totalorder %s1988_s5, %s1379_s4 }
 0x19b   : > { %p1376_p1 = pnand %p1375_p0, %p1249_p13  ;;  %p1382_p4 = scmp.lt.s32.totalorder %s1380_s15, %s1374_s29 }
 0x19d   : > { %p1377_p2 = pneg %p1376_p1  ;;  %p1383_p5 = por %p1382_p4, %p1381_p3 }
 0x19f   : > { %p1384_p6 = pnand %p1383_p5, %p1377_p2 }
 0x1a1   : > { %1387 = shalt.err (!%p1384_p6)
}
 0x1a2   : > { %s1388_s6 = scalar_lea.hbm %s1985_s28, %s1976_s19  ;;  %s1392_s9 = scalar_lea.hbm %s2040_s3, 16000 }
 0x1a3   : > { %p1389_p7 = scmp.ne.s32.totalorder %s1985_s28, %s1388_s6  ;;  %p1393_p11 = scmp.lt.u32.totalorder %s1985_s28, %s2040_s3 }
 0x1a4   : > { %p1394_p12 = scmp.lt.u32.totalorder %s1392_s9, %s1388_s6  ;;  %p1396_p1 = scmp.lt.u32.totalorder %s1388_s6, %s1985_s28 }
 0x1a5   : > { %p1390_p9 = pnand %p1389_p7, %p1249_p13 }
 0x1a6   : > { %p1395_p0 = por %p1394_p12, %p1393_p11 }
 0x1a7   : > { %p1391_p10 = pneg %p1390_p9 }
 0x1a8   : > { %p1397_p2 = por %p1396_p1, %p1395_p0 }
 0x1aa   : > { %p1398_p3 = pnand %p1397_p2, %p1391_p10 }
 0x1ac   : > { %1401 = shalt.err (!%p1398_p3)
}
 0x1ad   : > { %s1456_s18 = smov 128   ;;  %s1457_s21 = smov 8  }
 0x1ae   : > { %1077 = dma.vmem_to_hbm [thread:$0]  (%p1249_p13), %s1988_s5, %s1976_s19, %s1985_s28, %s1971_s26, %s1456_s18, %s1456_s18, %s1457_s21  }
 0x1af PF: > { %p1322_p4 = scmp.ge.s32.totalorder %s1452_s17, 2  ;;  %s1086_s23 = sand.u32 1, %s1432_s12  }
 0x1b0   : > { %s1087_s27 = scalar_lea.sflag [#allocation3], %s1086_s23 }
 0x1b1   : > { %p1319_p5 = pnand %p1322_p4, %p1525_p8 }
 0x1b3   : > { %1427 = dma.done.wait (!%p1319_p5), %s1087_s27, 8192  }
 0x1b4   : > { %1429 = vsyncadd (!%p1319_p5), %s1087_s27, 4294959104  ;;  %s16_s17 = sadd.s32 1, %s1452_s17   ;;  %s2043_s12 = smov %s1436_s13 }
 0x1b5   : > { %p13_p6 = scmp.ge.s32.totalorder %s16_s17, 4   ;;  %s2044_s13 = smov %s1440_s14 }
 0x1b6   : > { %s2045_s14 = smov %s1531_s25  ;;  %s2046_s15 = smov %s1448_s16 }
 0x1b7   : > { %s2047_s16 = smov %s2049_s20  ;;  %15 = sbr.rel (!%p13_p6) target bundleno = 4 (0x4), region = 73 }
 0x1be   :  { %1092 = vsyncpa [#allocation3], 1 }
 0x1bf   :  { %1094 = vsyncpa [#allocation3 + $0x1], 1 }

</bundles_post_ra>
